<compile_context>
chip_gen: v5e
topology: v5e:2x2
jax: 0.10.0
libtpu: 0.0.40
codegen_flags: <defaults>
</compile_context>

<pallas_src>
import functools

import jax
import jax.numpy as jnp
from jax.experimental import pallas as pl
from jax.experimental.pallas import tpu as pltpu

_LANES = 128            # vreg lane width
_MXU_WIDE = 256         # v6e/v7x MXU width: pad classes to this once > 128
_SUBLANES = 8           # vreg sublane width: batch tiles are multiples of 8
_F32_BYTES = 4
_FALLBACK_VMEM = 64 * 1024 * 1024   # smallest per-core VMEM (v7x); safe default


def _round_up(x, m):
    return (x + m - 1) // m * m


def _vmem_budget_bytes():
    """~75% of per-core VMEM: 48 MiB on 64 MiB parts (v7x), 96 MiB on the
    128 MiB parts (v5e/v6e). Conservative fallback if the query fails."""
    cap = _FALLBACK_VMEM
    try:
        info = pltpu.get_tpu_info()
        c = getattr(info, "vmem_capacity_bytes", None)
        if c:
            cap = int(c)
    except Exception:
        pass
    return (cap // 4) * 3


def _single_buffered_spec(shape, index_map):
    """BlockSpec for an operand whose block never changes: request a single
    VMEM buffer (no pointless double buffer for the resident W / bias).
    Falls back to a plain BlockSpec if pipeline_mode is unavailable."""
    try:
        return pl.BlockSpec(shape, index_map, pipeline_mode=pl.Buffered(1))
    except Exception:
        return pl.BlockSpec(shape, index_map)


def _pick_tile_m(batch, dim, n_pad, budget):
    """Largest 8-row batch tile whose VMEM footprint fits `budget`:
       2*tile*dim*4 (X dbl-buf) + 2*tile*n_pad*4 (out dbl-buf)
       + dim*n_pad*4 (resident W) + n_pad*4 (bias)."""
    resident = dim * n_pad * _F32_BYTES + n_pad * _F32_BYTES
    per_row = 2 * (dim + n_pad) * _F32_BYTES
    avail = budget - resident
    if avail >= per_row * _SUBLANES:
        tile = (avail // per_row) // _SUBLANES * _SUBLANES
    else:
        tile = _SUBLANES  # see TODO(synk) above for the very-large-dim case
    # No point tiling past the (sublane-rounded) batch.
    tile = min(tile, _round_up(batch, _SUBLANES))
    # Give both TensorCores work on v7x once there is enough batch;
    # measured cost of one extra grid step elsewhere is negligible.
    if batch >= 2 * _SUBLANES:
        tile = min(tile, _round_up(pl.cdiv(batch, 2), _SUBLANES))
    return int(max(tile, _SUBLANES))


def _linear_kernel(x_ref, w_ref, b_ref, o_ref):
    # x_ref: (tile_m, dim)  w_ref: (dim, n_pad)  b_ref: (1, n_pad)
    # o_ref: (tile_m, n_pad)
    acc = jnp.dot(x_ref[...], w_ref[...], preferred_element_type=jnp.float32)
    o_ref[...] = (acc + b_ref[...]).astype(o_ref.dtype)


def prepare_params(weight, bias):
    """One-time parameter prep: transpose to (dim, classes) and zero-pad the
    class dimension to a lane-dense width (128; 256 once classes > 128 so a
    single N tile fills the 256-wide v6e/v7x MXU). Padded columns (incl. the
    bias) are zero, so results in the first `classes` columns are exact."""
    classes, dim = weight.shape
    lane = _LANES if classes <= _LANES else _MXU_WIDE
    n_pad = _round_up(classes, lane)
    w_pad = jnp.zeros((dim, n_pad), weight.dtype).at[:, :classes].set(weight.T)
    b_pad = jnp.zeros((1, n_pad), bias.dtype).at[:, :classes].set(
        bias.reshape(1, classes))
    return w_pad, b_pad


@functools.partial(jax.jit,
                   static_argnames=("classes", "tile_m", "trim_output"))
def layer_classifier_forward_prepared(x, w_pad, b_pad, *, classes,
                                      tile_m=None, trim_output=True):
    """Forward pass with pre-prepared (padded, transposed) parameters.

    x      : [batch, dim]      float32
    w_pad  : [dim, n_pad]      float32   (n_pad = padded class count)
    b_pad  : [1, n_pad]        float32
    returns: [batch, classes]  float32   (or [batch, n_pad] if trim_output=False)
    """
    batch, dim = x.shape
    n_pad = w_pad.shape[1]

    budget = _vmem_budget_bytes()
    if tile_m is None:
        tile_m = _pick_tile_m(batch, dim, n_pad, budget)
    tile_m = max(_SUBLANES, _round_up(int(tile_m), _SUBLANES))

    # Ragged last block is handled by Pallas: OOB input rows are never used
    # for in-bounds outputs (row-wise op) and OOB output rows are dropped.
    grid_m = pl.cdiv(batch, tile_m)

    cost = pl.CostEstimate(
        flops=2 * batch * dim * n_pad,
        transcendentals=0,
        bytes_accessed=(batch * dim + dim * n_pad + n_pad + batch * n_pad)
        * _F32_BYTES,
    )

    out = pl.pallas_call(
        _linear_kernel,
        out_shape=jax.ShapeDtypeStruct((batch, n_pad), x.dtype),
        grid_spec=pltpu.PrefetchScalarGridSpec(
            num_scalar_prefetch=0,
            grid=(grid_m,),
            in_specs=[
                # X streams one batch tile per grid step (double-buffered).
                pl.BlockSpec((tile_m, dim), lambda i: (i, 0)),
                # W and bias map to block (0, 0) every step: fetched once,
                # resident in VMEM, single-buffered.
                _single_buffered_spec((dim, n_pad), lambda i: (0, 0)),
                _single_buffered_spec((1, n_pad), lambda i: (0, 0)),
            ],
            out_specs=pl.BlockSpec((tile_m, n_pad), lambda i: (i, 0)),
        ),
        compiler_params=pltpu.CompilerParams(
            # Batch tiles are independent -> sharded across TensorCores.
            dimension_semantics=("parallel",),
            vmem_limit_bytes=budget,
        ),
        cost_estimate=cost,
    )(x, w_pad, b_pad)

    if trim_output:
        out = out[:, :classes]
    return out


def layer_classifier_forward(x, weight, bias, *, tile_m=None):
    """Convenience wrapper matching nn.Linear(dim, classes)(x) with PyTorch
    parameter layout (weight: [classes, dim], bias: [classes]).

    NOTE: this re-transposes/pads the weights on every call; for repeated use
    call prepare_params() once and use layer_classifier_forward_prepared()."""
    classes = weight.shape[0]
    w_pad, b_pad = prepare_params(weight, bias)
    return layer_classifier_forward_prepared(
        x, w_pad, b_pad, classes=classes, tile_m=tile_m)


if __name__ == "__main__":
    # LayerClassifier(dim=32, classes=2), batch=8
    batch, dim, classes = 8, 32, 2

    key = jax.random.PRNGKey(0)
    kx, kw, kb = jax.random.split(key, 3)

    x = jax.random.normal(kx, (batch, dim), dtype=jnp.float32)
    # Deterministic synthetic parameters (PyTorch nn.Linear shapes).
    weight = jax.random.normal(kw, (classes, dim), dtype=jnp.float32) * 0.1
    bias = jax.random.normal(kb, (classes,), dtype=jnp.float32) * 0.1

    # Prepare parameters once (transpose + lane padding), then run the kernel.
    w_pad, b_pad = prepare_params(weight, bias)
    out = layer_classifier_forward_prepared(x, w_pad, b_pad, classes=classes)
    out = jax.block_until_ready(out)

    # Reference check against plain JAX linear.
    ref = x @ weight.T + bias
    assert out.shape == (batch, classes)
    assert jnp.allclose(out, ref, atol=1e-5, rtol=1e-5)

    print("KERNEL_OK")
</pallas_src>

<mosaic_0001>
module attributes {stable_mosaic.version = 11 : i64} {
  func.func @_linear_kernel(%arg0: i32, %arg1: memref<8x32xf32, #tpu.memory_space<vmem>>, %arg2: memref<32x128xf32, #tpu.memory_space<vmem>>, %arg3: memref<1x128xf32, #tpu.memory_space<vmem>>, %arg4: memref<8x128xf32, #tpu.memory_space<vmem>>) attributes {dimension_semantics = [#tpu.dimension_semantics<parallel>], iteration_bounds = array<i64: 1>, scalar_prefetch = 0 : i64, scratch_operands = 0 : i64, tpu.core_type = #tpu.core_type<tc>, window_params = [{transform_indices = @transform_0, window_bounds = array<i64: 8, 32>}, {pipeline_mode = #tpu.pipeline_mode<synchronous>, transform_indices = @transform_1, window_bounds = array<i64: 32, 128>}, {pipeline_mode = #tpu.pipeline_mode<synchronous>, transform_indices = @transform_2, window_bounds = array<i64: 1, 128>}, {transform_indices = @transform_3, window_bounds = array<i64: 8, 128>}]} {
    %c0 = arith.constant 0 : index
    %c0_0 = arith.constant 0 : index
    %0 = vector.load %arg1[%c0, %c0_0] : memref<8x32xf32, #tpu.memory_space<vmem>>, vector<8x32xf32>
    %c0_1 = arith.constant 0 : index
    %c0_2 = arith.constant 0 : index
    %1 = vector.load %arg2[%c0_1, %c0_2] : memref<32x128xf32, #tpu.memory_space<vmem>>, vector<32x128xf32>
    %cst = arith.constant dense<0.000000e+00> : vector<8x128xf32>
    %2 = tpu.matmul %0, %1, %cst {dimension_numbers = #tpu.dot_dimension_numbers<[1], [0], [0], [1], [0, 0, 1, 1], [], []>} : vector<8x32xf32>, vector<32x128xf32>, vector<8x128xf32> -> vector<8x128xf32>
    %c0_3 = arith.constant 0 : index
    %c0_4 = arith.constant 0 : index
    %3 = vector.load %arg3[%c0_3, %c0_4] : memref<1x128xf32, #tpu.memory_space<vmem>>, vector<1x128xf32>
    %4 = vector.broadcast %3 : vector<1x128xf32> to vector<8x128xf32>
    %5 = arith.addf %2, %4 : vector<8x128xf32>
    %c0_5 = arith.constant 0 : index
    %c0_6 = arith.constant 0 : index
    %6 = vector.load %arg4[%c0_5, %c0_6] : memref<8x128xf32, #tpu.memory_space<vmem>>, vector<8x128xf32>
    tpu.vector_store %arg4[%c0_5, %c0_6], %5 {strides = array<i32>} : memref<8x128xf32, #tpu.memory_space<vmem>>, vector<8x128xf32>,
    return
  }
  func.func @transform_0(%arg0: i32) -> (i32, i32) {
    %c0_i32 = arith.constant 0 : i32
    %c0_i32_0 = arith.constant 0 : i32
    return %arg0, %c0_i32 : i32, i32
  }
  func.func @transform_1(%arg0: i32) -> (i32, i32) {
    %c0_i32 = arith.constant 0 : i32
    %c0_i32_0 = arith.constant 0 : i32
    %c0_i32_1 = arith.constant 0 : i32
    return %c0_i32, %c0_i32_0 : i32, i32
  }
  func.func @transform_2(%arg0: i32) -> (i32, i32) {
    %c0_i32 = arith.constant 0 : i32
    %c0_i32_0 = arith.constant 0 : i32
    %c0_i32_1 = arith.constant 0 : i32
    return %c0_i32, %c0_i32_0 : i32, i32
  }
  func.func @transform_3(%arg0: i32) -> (i32, i32) {
    %c0_i32 = arith.constant 0 : i32
    %c0_i32_0 = arith.constant 0 : i32
    return %arg0, %c0_i32 : i32, i32
  }
}

</mosaic_0001>

<bundles_post_ra>
// kernel: layer_classifier_forward_prepared.1
= control target key start
LH: loop header
LB: loop body
LE: loop exit
PB: predicated region body
PF: predicated region fallthrough
CT: control target
= control target key end

     0   :  { %8 = vsyncpa [#allocation3], 0  ;;  %s178_s0 = inlined_call_operand.hbm [shape: f32[8,32], index: 0, kind: input, shape index: {}]   ;;  %s179_s1 = inlined_call_operand.hbm [shape: f32[32,128], index: 1, kind: input, shape index: {}]   ;;  %s180_s2 = inlined_call_operand.vmem [shape: f32[1,128], index: 2, kind: input, shape index: {}]   ;;  %s181_s3 = inlined_call_operand.vmem [shape: f32[8,128], index: 3, kind: output, shape index: {}]  }
   0x1   :  { %s15_s14 = sshll.u32 %s178_s0, 4  ;;  %s16_s14 = int_to_ptr.hbm [resolvable:$true] %s15_s14 }
   0x2   :  { %9 = vsyncpa [#allocation5], 0  ;;  %s142_s15 = smov [#allocation2]   ;;  %s25_s19 = sshll.u32 %s179_s1, 4  ;;  %s26_s19 = int_to_ptr.hbm [resolvable:$true] %s25_s19 }
   0x3   :  { %s17_s16 = sshll.u32 %s142_s15, 4  ;;  %s143_s20 = smov [#allocation4]   ;;  %s18_s16 = int_to_ptr.vmem [resolvable:$true] %s17_s16 }
   0x4   :  { %20 = dma.hbm_to_vmem [thread:$0]  %s16_s14, 128, %s18_s16, [#allocation3]  }
   0x5   :  { %s27_s21 = sshll.u32 %s143_s20, 4  ;;  %s144_s22 = smov 128   ;;  %s28_s21 = int_to_ptr.vmem [resolvable:$true] %s27_s21 }
   0x6   :  { %s145_s23 = smov 8  }
   0x7   :  { %33 = dma.hbm_to_vmem [thread:$0]  %s26_s19, 512, %s28_s21, [#allocation5], %s144_s22, %s144_s22, %s145_s23  }
   0x8   :  { %138 = dma.done.wait [#allocation3], 128  }
   0x9   :  { %139 = vsyncadd [#allocation3], 4294967168 }
   0xa   :  { %140 = dma.done.wait [#allocation5], 512  }
   0xb   :  { %141 = vsyncadd [#allocation5], 4294966784  ;;  %v48_v0 = vld [vmem:[#allocation4 + $0x18] sm:$0xff]  ;;  %v47_v1 = vld [vmem:[#allocation4 + $0x10] sm:$0xff]  ;;  %vm53_vm0 = vcmask 261120  }
   0xc   :  { %69 = vmatpush.msra.mxu0 %v48_v0  ;;  %v46_v2 = vld [vmem:[#allocation4 + $0x8] sm:$0xff]  ;;  %v45_v3 = vld [vmem:[#allocation4] sm:$0xff]  ;;  %v44_v4 = vld [vmem:[#allocation2] sm:$0xff] }
   0xd   :  { %v89_v5 = vld [vmem:[%s180_s2] ss:$0 sm:$0xff] }
   0xe   :  { %70 = vmatpush.msra.mxu0 %v47_v1 }
  0x10   :  { %71 = vmatpush.msra.mxu0 %v46_v2 }
  0x12   :  { %72 = vmatpush.msra.mxu0 %v45_v3 }
  0x13   :  { %84 = vmatmul.msk.f32.vlgmr.msra.gmra.mxu0 %vm53_vm0, %v44_v4 }
  0x90   :  { %v74_v6 = vpop.f32.mrf.mxu0 }
  0x91   :  { %v75_v7 = vadd.f32 %v89_v5, %v74_v6 }
  0x93   :  { %77 = vst [vmem:[%s181_s3] sm:$0xff] %v75_v7 }
  0x94   :  { %82 = vsyncpa [#allocation3], 1 }
  0x95   :  { %83 = vsyncpa [#allocation5], 1 }

</bundles_post_ra>
